<compile_context>
chip_gen: v6e
topology: v6e:2x2x1
jax: 0.10.0
libtpu: 0.0.40
codegen_flags: <defaults>
</compile_context>

<pallas_src>
import functools

import jax
import jax.numpy as jnp
from jax.experimental import pallas as pl
from jax.experimental.pallas import tpu as pltpu

LN_EPS = 1e-5  # PyTorch nn.LayerNorm default

# Row layout of the packed small-parameter array.
_R_B1, _R_G1, _R_BE1, _R_B2, _R_G2, _R_BE2, _R_BA, _R_WQ, _R_BQ = range(9)
_PACK_ROWS = 16  # pad sublane count to a multiple of 8


def _round_up(x, m):
    return (x + m - 1) // m * m


def _cdiv(a, b):
    return -(-a // b)


def _layernorm(x, gamma, beta):
    # Single pass: the two cross-lane reductions (mean, E[x^2]) are independent.
    # Clamp the variance so catastrophic cancellation can never push a negative
    # value into rsqrt.
    mean = jnp.mean(x, axis=-1, keepdims=True)
    msq = jnp.mean(x * x, axis=-1, keepdims=True)
    var = jnp.maximum(msq - mean * mean, 0.0)
    return (x - mean) * jax.lax.rsqrt(var + LN_EPS) * gamma + beta


def critic_kernel(x_ref, w1a_ref, w2_ref, vec_ref, out_ref,
                  *, fc1_dims, fc1_pad, fc2_dims):
    x = x_ref[...]                         # [TB, input_dims + n_actions]
    vecs = vec_ref[...]                    # [16, max(fc1, fc2)] packed params

    b1 = vecs[_R_B1:_R_B1 + 1, :fc1_dims]
    g1 = vecs[_R_G1:_R_G1 + 1, :fc1_dims]
    be1 = vecs[_R_BE1:_R_BE1 + 1, :fc1_dims]
    b2 = vecs[_R_B2:_R_B2 + 1, :fc2_dims]
    g2 = vecs[_R_G2:_R_G2 + 1, :fc2_dims]
    be2 = vecs[_R_BE2:_R_BE2 + 1, :fc2_dims]
    ba = vecs[_R_BA:_R_BA + 1, :fc2_dims]
    wq = vecs[_R_WQ:_R_WQ + 1, :fc2_dims]  # q-head weight as a (1, fc2) row
    bq = vecs[_R_BQ:_R_BQ + 1, 0:1]        # (1, 1)

    # One MXU matmul for both fc1(state) and action_value(action):
    #   [state | action] @ [[w1, 0], [0, wa]] = [fc1_pre | 0 | av_pre]
    # (wa's output columns start at the 128-lane boundary fc1_pad, so the
    #  av slice below is vreg aligned -> no lane rotate.)
    y1 = jnp.dot(x, w1a_ref[...], preferred_element_type=jnp.float32)
    h1 = jnp.maximum(_layernorm(y1[:, :fc1_dims] + b1, g1, be1), 0.0)
    av = y1[:, fc1_pad:fc1_pad + fc2_dims] + ba           # action_value(action)

    # fc2 -> LayerNorm (bn2 wraps ONLY fc2, matching the PyTorch module).
    h2 = _layernorm(
        jnp.dot(h1, w2_ref[...], preferred_element_type=jnp.float32) + b2,
        g2, be2)
    sa = jnp.maximum(h2 + av, 0.0)                        # [TB, fc2]

    # q head on the MXU:  wq_row @ sa^T -> (1, TB).  The result is produced
    # directly in lane-major form (lane-dense store, no relayout) and the
    # cross-lane reduction is moved off the XLU onto the idle MXU.
    # (NT dimension numbers, same pattern as q @ k^T in flash attention.)
    q = jax.lax.dot_general(wq, sa, (((1,), (1,)), ((), ())),
                            preferred_element_type=jnp.float32) + bq
    out_ref[...] = q.reshape(out_ref.shape).astype(out_ref.dtype)


def critic_forward(state, action, params, *, block_b=2048, split_threshold=512):
    """Fused critic forward.  state: [B, D_in], action: [B, n_actions] -> [B, 1]."""
    B, input_dims = state.shape
    n_actions = action.shape[1]
    fc1_dims = params["w1"].shape[1]
    fc2_dims = params["w2"].shape[1]
    fc1_pad = _round_up(fc1_dims, 128)     # wa output columns start lane-aligned
    dmax = max(fc1_dims, fc2_dims)
    d_in = input_dims + n_actions

    # Single fused input: [state | action] -> one DMA stream per tile and no
    # in-kernel lane concat.
    x = jnp.concatenate([state.astype(jnp.float32),
                         action.astype(jnp.float32)], axis=1)

    # Block-diagonal first-layer weight (one MXU matmul for fc1 + action_value).
    w1a = jnp.zeros((d_in, fc1_pad + fc2_dims), jnp.float32)
    w1a = w1a.at[:input_dims, :fc1_dims].set(params["w1"].astype(jnp.float32))
    w1a = w1a.at[input_dims:, fc1_pad:].set(params["wa"].astype(jnp.float32))
    w2 = params["w2"].astype(jnp.float32)

    # Pack all small (1, D) vectors into a single VMEM ref (one DMA).
    def row(v):
        v = jnp.asarray(v, jnp.float32).reshape(-1)
        return jnp.pad(v, (0, dmax - v.shape[0]))

    packed = jnp.zeros((_PACK_ROWS, dmax), jnp.float32)
    for r, v in ((_R_B1, params["b1"]), (_R_G1, params["g1"]),
                 (_R_BE1, params["be1"]), (_R_B2, params["b2"]),
                 (_R_G2, params["g2"]), (_R_BE2, params["be2"]),
                 (_R_BA, params["ba"]), (_R_WQ, params["wq"]),
                 (_R_BQ, params["bq"])):
        packed = packed.at[r].set(row(v))

    # Batch tiling: balanced tiles (padding waste < 8 rows/step), >= 2 grid
    # steps once B >= split_threshold (both v7x TensorCores get work), and a
    # 2048-row cap so the ~0.35us/step pipeline overhead is amortized.
    n_steps = _cdiv(B, block_b)
    if B >= split_threshold:
        n_steps = max(n_steps, 2)
    tb = _round_up(_cdiv(B, n_steps), 8)
    n_tiles = _cdiv(B, tb)
    b_pad = n_tiles * tb
    if b_pad != B:
        x = jnp.pad(x, ((0, b_pad - B), (0, 0)))

    kernel = functools.partial(critic_kernel, fc1_dims=fc1_dims,
                               fc1_pad=fc1_pad, fc2_dims=fc2_dims)

    out = pl.pallas_call(
        kernel,
        out_shape=jax.ShapeDtypeStruct((n_tiles, 1, tb), jnp.float32),
        grid_spec=pltpu.PrefetchScalarGridSpec(
            num_scalar_prefetch=0,
            grid=(n_tiles,),
            in_specs=[
                pl.BlockSpec((tb, d_in), lambda i: (i, 0)),
                # Weights: constant index_map -> stay VMEM-resident across tiles.
                pl.BlockSpec((d_in, fc1_pad + fc2_dims), lambda i: (0, 0)),
                pl.BlockSpec((fc1_dims, fc2_dims), lambda i: (0, 0)),
                pl.BlockSpec((_PACK_ROWS, dmax), lambda i: (0, 0)),
            ],
            # Lane-dense output: one (1, tb) row per grid step.
            out_specs=pl.BlockSpec((1, 1, tb), lambda i: (i, 0, 0)),
        ),
        compiler_params=pltpu.CompilerParams(
            dimension_semantics=("parallel",)),
    )(x, w1a, w2, packed)

    return out.reshape(b_pad)[:B].reshape(B, 1)


def init_params(key, input_dims, fc1_dims, fc2_dims, n_actions):
    """Synthetic init mirroring the module's uniform fan-based init."""
    ks = jax.random.split(key, 8)

    def u(k, shape, bound):
        return jax.random.uniform(k, shape, jnp.float32, -bound, bound)

    f1 = 1.0 / jnp.sqrt(fc1_dims)
    f2 = 1.0 / jnp.sqrt(fc2_dims)
    f3 = 0.003
    f4 = 1.0 / jnp.sqrt(fc2_dims)

    return {
        "w1": u(ks[0], (input_dims, fc1_dims), f1),   # stored [in, out]
        "b1": u(ks[1], (1, fc1_dims), f1),
        "g1": jnp.ones((1, fc1_dims), jnp.float32),
        "be1": jnp.zeros((1, fc1_dims), jnp.float32),
        "w2": u(ks[2], (fc1_dims, fc2_dims), f2),
        "b2": u(ks[3], (1, fc2_dims), f2),
        "g2": jnp.ones((1, fc2_dims), jnp.float32),
        "be2": jnp.zeros((1, fc2_dims), jnp.float32),
        "wa": u(ks[4], (n_actions, fc2_dims), f4),
        "ba": u(ks[5], (1, fc2_dims), f4),
        "wq": u(ks[6], (fc2_dims, 1), f3),
        "bq": u(ks[7], (1, 1), f3),
    }


def reference_forward(state, action, p):
    h1 = state @ p["w1"] + p["b1"]
    m = h1.mean(-1, keepdims=True)
    v = ((h1 - m) ** 2).mean(-1, keepdims=True)
    h1 = (h1 - m) / jnp.sqrt(v + LN_EPS) * p["g1"] + p["be1"]
    h1 = jnp.maximum(h1, 0.0)
    h2 = h1 @ p["w2"] + p["b2"]
    m = h2.mean(-1, keepdims=True)
    v = ((h2 - m) ** 2).mean(-1, keepdims=True)
    h2 = (h2 - m) / jnp.sqrt(v + LN_EPS) * p["g2"] + p["be2"]
    av = action @ p["wa"] + p["ba"]
    sa = jnp.maximum(h2 + av, 0.0)
    return sa @ p["wq"] + p["bq"]


if __name__ == "__main__":
    INPUT_DIMS, FC1, FC2, N_ACTIONS = 32, 64, 32, 8

    key = jax.random.PRNGKey(0)
    k_state, k_action, k_params = jax.random.split(key, 3)
    params = init_params(k_params, INPUT_DIMS, FC1, FC2, N_ACTIONS)

    # 8: single tiny tile; 12: exercises batch padding; 600: exercises the
    # multi-tile ("parallel") grid path with a balanced 304-row tile.
    for B in (8, 12, 600):
        ks, ka = jax.random.split(jax.random.fold_in(k_state, B))
        state = jax.random.normal(ks, (B, INPUT_DIMS), jnp.float32)
        action = jax.random.normal(ka, (B, N_ACTIONS), jnp.float32)

        out = critic_forward(state, action, params)
        jax.block_until_ready(out)

        ref = reference_forward(state, action, params)
        assert out.shape == (B, 1)
        assert jnp.allclose(out, ref, atol=1e-4, rtol=1e-4), (B, out, ref)

    print("KERNEL_OK")
</pallas_src>

<mosaic_0001>
module attributes {stable_mosaic.version = 11 : i64} {
  func.func @critic_kernel(%arg0: i32, %arg1: memref<8x40xf32, #tpu.memory_space<vmem>>, %arg2: memref<40x160xf32, #tpu.memory_space<vmem>>, %arg3: memref<64x32xf32, #tpu.memory_space<vmem>>, %arg4: memref<16x64xf32, #tpu.memory_space<vmem>>, %arg5: memref<1x1x8xf32, #tpu.memory_space<vmem>>) attributes {dimension_semantics = [#tpu.dimension_semantics<parallel>], iteration_bounds = array<i64: 1>, scalar_prefetch = 0 : i64, scratch_operands = 0 : i64, tpu.core_type = #tpu.core_type<tc>, window_params = [{transform_indices = @transform_0, window_bounds = array<i64: 8, 40>}, {pipeline_mode = #tpu.pipeline_mode<synchronous>, transform_indices = @transform_1, window_bounds = array<i64: 40, 160>}, {pipeline_mode = #tpu.pipeline_mode<synchronous>, transform_indices = @transform_2, window_bounds = array<i64: 64, 32>}, {pipeline_mode = #tpu.pipeline_mode<synchronous>, transform_indices = @transform_3, window_bounds = array<i64: 16, 64>}, {transform_indices = @transform_4, window_bounds = array<i64: 1, 1, 8>}]} {
    %c0 = arith.constant 0 : index
    %c0_0 = arith.constant 0 : index
    %0 = vector.load %arg1[%c0, %c0_0] : memref<8x40xf32, #tpu.memory_space<vmem>>, vector<8x40xf32>
    %c0_1 = arith.constant 0 : index
    %c0_2 = arith.constant 0 : index
    %1 = vector.load %arg4[%c0_1, %c0_2] : memref<16x64xf32, #tpu.memory_space<vmem>>, vector<16x64xf32>
    %2 = vector.extract_strided_slice %1 {offsets = [0, 0], sizes = [1, 64], strides = [1, 1]} : vector<16x64xf32> to vector<1x64xf32>
    %3 = vector.extract_strided_slice %1 {offsets = [1, 0], sizes = [1, 64], strides = [1, 1]} : vector<16x64xf32> to vector<1x64xf32>
    %4 = vector.extract_strided_slice %1 {offsets = [2, 0], sizes = [1, 64], strides = [1, 1]} : vector<16x64xf32> to vector<1x64xf32>
    %5 = vector.extract_strided_slice %1 {offsets = [3, 0], sizes = [1, 32], strides = [1, 1]} : vector<16x64xf32> to vector<1x32xf32>
    %6 = vector.extract_strided_slice %1 {offsets = [4, 0], sizes = [1, 32], strides = [1, 1]} : vector<16x64xf32> to vector<1x32xf32>
    %7 = vector.extract_strided_slice %1 {offsets = [5, 0], sizes = [1, 32], strides = [1, 1]} : vector<16x64xf32> to vector<1x32xf32>
    %8 = vector.extract_strided_slice %1 {offsets = [6, 0], sizes = [1, 32], strides = [1, 1]} : vector<16x64xf32> to vector<1x32xf32>
    %9 = vector.extract_strided_slice %1 {offsets = [7, 0], sizes = [1, 32], strides = [1, 1]} : vector<16x64xf32> to vector<1x32xf32>
    %10 = vector.extract_strided_slice %1 {offsets = [8, 0], sizes = [1, 1], strides = [1, 1]} : vector<16x64xf32> to vector<1x1xf32>
    %c0_3 = arith.constant 0 : index
    %c0_4 = arith.constant 0 : index
    %11 = vector.load %arg2[%c0_3, %c0_4] : memref<40x160xf32, #tpu.memory_space<vmem>>, vector<40x160xf32>
    %cst = arith.constant dense<0.000000e+00> : vector<8x160xf32>
    %12 = tpu.matmul %0, %11, %cst {dimension_numbers = #tpu.dot_dimension_numbers<[1], [0], [0], [1], [0, 0, 1, 1], [], []>} : vector<8x40xf32>, vector<40x160xf32>, vector<8x160xf32> -> vector<8x160xf32>
    %13 = vector.extract_strided_slice %12 {offsets = [0, 0], sizes = [8, 64], strides = [1, 1]} : vector<8x160xf32> to vector<8x64xf32>
    %14 = vector.broadcast %2 : vector<1x64xf32> to vector<8x64xf32>
    %15 = arith.addf %13, %14 : vector<8x64xf32>
    %cst_5 = arith.constant dense<0.000000e+00> : vector<8xf32>
    %16 = vector.multi_reduction <add>, %15, %cst_5 [1] : vector<8x64xf32> to vector<8xf32>
    %17 = vector.shape_cast %16 : vector<8xf32> to vector<8x1xf32>
    %cst_6 = arith.constant 6.400000e+01 : f32
    %18 = vector.broadcast %cst_6 : f32 to vector<8x1xf32>
    %19 = arith.divf %17, %18 : vector<8x1xf32>
    %20 = arith.mulf %15, %15 : vector<8x64xf32>
    %cst_7 = arith.constant dense<0.000000e+00> : vector<8xf32>
    %21 = vector.multi_reduction <add>, %20, %cst_7 [1] : vector<8x64xf32> to vector<8xf32>
    %22 = vector.shape_cast %21 : vector<8xf32> to vector<8x1xf32>
    %cst_8 = arith.constant 6.400000e+01 : f32
    %23 = vector.broadcast %cst_8 : f32 to vector<8x1xf32>
    %24 = arith.divf %22, %23 : vector<8x1xf32>
    %25 = arith.mulf %19, %19 : vector<8x1xf32>
    %26 = arith.subf %24, %25 : vector<8x1xf32>
    %cst_9 = arith.constant 0.000000e+00 : f32
    %27 = vector.broadcast %cst_9 : f32 to vector<8x1xf32>
    %28 = arith.maximumf %26, %27 : vector<8x1xf32>
    %29 = vector.broadcast %19 : vector<8x1xf32> to vector<8x64xf32>
    %30 = arith.subf %15, %29 : vector<8x64xf32>
    %cst_10 = arith.constant 9.99999974E-6 : f32
    %31 = vector.broadcast %cst_10 : f32 to vector<8x1xf32>
    %32 = arith.addf %28, %31 : vector<8x1xf32>
    %33 = math.rsqrt %32 : vector<8x1xf32>
    %34 = vector.broadcast %33 : vector<8x1xf32> to vector<8x64xf32>
    %35 = arith.mulf %30, %34 : vector<8x64xf32>
    %36 = vector.broadcast %3 : vector<1x64xf32> to vector<8x64xf32>
    %37 = arith.mulf %35, %36 : vector<8x64xf32>
    %38 = vector.broadcast %4 : vector<1x64xf32> to vector<8x64xf32>
    %39 = arith.addf %37, %38 : vector<8x64xf32>
    %cst_11 = arith.constant 0.000000e+00 : f32
    %40 = vector.broadcast %cst_11 : f32 to vector<8x64xf32>
    %41 = arith.maximumf %39, %40 : vector<8x64xf32>
    %42 = vector.extract_strided_slice %12 {offsets = [0, 128], sizes = [8, 32], strides = [1, 1]} : vector<8x160xf32> to vector<8x32xf32>
    %43 = vector.broadcast %8 : vector<1x32xf32> to vector<8x32xf32>
    %44 = arith.addf %42, %43 : vector<8x32xf32>
    %c0_12 = arith.constant 0 : index
    %c0_13 = arith.constant 0 : index
    %45 = vector.load %arg3[%c0_12, %c0_13] : memref<64x32xf32, #tpu.memory_space<vmem>>, vector<64x32xf32>
    %cst_14 = arith.constant dense<0.000000e+00> : vector<8x32xf32>
    %46 = tpu.matmul %41, %45, %cst_14 {dimension_numbers = #tpu.dot_dimension_numbers<[1], [0], [0], [1], [0, 0, 1, 1], [], []>} : vector<8x64xf32>, vector<64x32xf32>, vector<8x32xf32> -> vector<8x32xf32>
    %47 = vector.broadcast %5 : vector<1x32xf32> to vector<8x32xf32>
    %48 = arith.addf %46, %47 : vector<8x32xf32>
    %cst_15 = arith.constant dense<0.000000e+00> : vector<8xf32>
    %49 = vector.multi_reduction <add>, %48, %cst_15 [1] : vector<8x32xf32> to vector<8xf32>
    %50 = vector.shape_cast %49 : vector<8xf32> to vector<8x1xf32>
    %cst_16 = arith.constant 3.200000e+01 : f32
    %51 = vector.broadcast %cst_16 : f32 to vector<8x1xf32>
    %52 = arith.divf %50, %51 : vector<8x1xf32>
    %53 = arith.mulf %48, %48 : vector<8x32xf32>
    %cst_17 = arith.constant dense<0.000000e+00> : vector<8xf32>
    %54 = vector.multi_reduction <add>, %53, %cst_17 [1] : vector<8x32xf32> to vector<8xf32>
    %55 = vector.shape_cast %54 : vector<8xf32> to vector<8x1xf32>
    %cst_18 = arith.constant 3.200000e+01 : f32
    %56 = vector.broadcast %cst_18 : f32 to vector<8x1xf32>
    %57 = arith.divf %55, %56 : vector<8x1xf32>
    %58 = arith.mulf %52, %52 : vector<8x1xf32>
    %59 = arith.subf %57, %58 : vector<8x1xf32>
    %cst_19 = arith.constant 0.000000e+00 : f32
    %60 = vector.broadcast %cst_19 : f32 to vector<8x1xf32>
    %61 = arith.maximumf %59, %60 : vector<8x1xf32>
    %62 = vector.broadcast %52 : vector<8x1xf32> to vector<8x32xf32>
    %63 = arith.subf %48, %62 : vector<8x32xf32>
    %cst_20 = arith.constant 9.99999974E-6 : f32
    %64 = vector.broadcast %cst_20 : f32 to vector<8x1xf32>
    %65 = arith.addf %61, %64 : vector<8x1xf32>
    %66 = math.rsqrt %65 : vector<8x1xf32>
    %67 = vector.broadcast %66 : vector<8x1xf32> to vector<8x32xf32>
    %68 = arith.mulf %63, %67 : vector<8x32xf32>
    %69 = vector.broadcast %6 : vector<1x32xf32> to vector<8x32xf32>
    %70 = arith.mulf %68, %69 : vector<8x32xf32>
    %71 = vector.broadcast %7 : vector<1x32xf32> to vector<8x32xf32>
    %72 = arith.addf %70, %71 : vector<8x32xf32>
    %73 = arith.addf %72, %44 : vector<8x32xf32>
    %cst_21 = arith.constant 0.000000e+00 : f32
    %74 = vector.broadcast %cst_21 : f32 to vector<8x32xf32>
    %75 = arith.maximumf %73, %74 : vector<8x32xf32>
    %cst_22 = arith.constant dense<0.000000e+00> : vector<1x8xf32>
    %76 = tpu.matmul %9, %75, %cst_22 {dimension_numbers = #tpu.dot_dimension_numbers<[1], [1], [0], [0], [0, 0, 1, 0], [], []>} : vector<1x32xf32>, vector<8x32xf32>, vector<1x8xf32> -> vector<1x8xf32>
    %77 = vector.broadcast %10 : vector<1x1xf32> to vector<1x8xf32>
    %78 = arith.addf %76, %77 : vector<1x8xf32>
    %79 = vector.shape_cast %78 : vector<1x8xf32> to vector<1x1x8xf32>
    %c0_23 = arith.constant 0 : index
    %c0_24 = arith.constant 0 : index
    %c0_25 = arith.constant 0 : index
    %80 = vector.load %arg5[%c0_23, %c0_24, %c0_25] : memref<1x1x8xf32, #tpu.memory_space<vmem>>, vector<1x1x8xf32>
    tpu.vector_store %arg5[%c0_23, %c0_24, %c0_25], %79 {strides = array<i32>} : memref<1x1x8xf32, #tpu.memory_space<vmem>>, vector<1x1x8xf32>,
    return
  }
  func.func @transform_0(%arg0: i32) -> (i32, i32) {
    %c0_i32 = arith.constant 0 : i32
    %c0_i32_0 = arith.constant 0 : i32
    return %arg0, %c0_i32 : i32, i32
  }
  func.func @transform_1(%arg0: i32) -> (i32, i32) {
    %c0_i32 = arith.constant 0 : i32
    %c0_i32_0 = arith.constant 0 : i32
    %c0_i32_1 = arith.constant 0 : i32
    return %c0_i32, %c0_i32_0 : i32, i32
  }
  func.func @transform_2(%arg0: i32) -> (i32, i32) {
    %c0_i32 = arith.constant 0 : i32
    %c0_i32_0 = arith.constant 0 : i32
    %c0_i32_1 = arith.constant 0 : i32
    return %c0_i32, %c0_i32_0 : i32, i32
  }
  func.func @transform_3(%arg0: i32) -> (i32, i32) {
    %c0_i32 = arith.constant 0 : i32
    %c0_i32_0 = arith.constant 0 : i32
    %c0_i32_1 = arith.constant 0 : i32
    return %c0_i32, %c0_i32_0 : i32, i32
  }
  func.func @transform_4(%arg0: i32) -> (i32, i32, i32) {
    %c0_i32 = arith.constant 0 : i32
    %c0_i32_0 = arith.constant 0 : i32
    %c0_i32_1 = arith.constant 0 : i32
    return %arg0, %c0_i32, %c0_i32_0 : i32, i32, i32
  }
}

</mosaic_0001>

<bundles_post_ra>
// kernel: tpu_custom_call.1
= control target key start
LH: loop header
LB: loop body
LE: loop exit
PB: predicated region body
PF: predicated region fallthrough
CT: control target
= control target key end

     0   :  { %9 = vsyncpa [#allocation3], 0  ;;  %s598_s0 = inlined_call_operand.hbm [shape: f32[8,40], index: 0, kind: input, shape index: {}]   ;;  %s599_s1 = inlined_call_operand.vmem [shape: f32[40,160], index: 1, kind: input, shape index: {}]   ;;  %s600_s2 = inlined_call_operand.vmem [shape: f32[64,32], index: 2, kind: input, shape index: {}]   ;;  %s601_s3 = inlined_call_operand.vmem [shape: f32[16,64], index: 3, kind: input, shape index: {}]   ;;  %s602_s4 = inlined_call_operand.hbm [shape: f32[1,1,8], index: 4, kind: output, shape index: {}]  }
   0x1   :  { %10 = vsyncpa [#allocation4], 0  ;;  %s464_s15 = smov [#allocation2]  }
   0x2   :  { %s17_s16 = sshll.u32 %s464_s15, 4  ;;  %s18_s16 = int_to_ptr.vmem [resolvable:$true] %s17_s16 }
   0x3   :  { %s428_s17 = scalar_lea.vmem %s18_s16, 128  ;;  %p433_p1 = scmp.lt.s32.totalorder %s18_s16, %s18_s16 }
   0x4   :  { %p429_p0 = scmp.ne.s32.totalorder %s18_s16, %s428_s17  ;;  %p434_p2 = scmp.lt.s32.totalorder %s428_s17, %s428_s17 }
   0x6   :  { %p435_p3 = por %p434_p2, %p433_p1 }
   0x8   :  { %p436_p4 = pnand %p435_p3, %p429_p0 }
   0xa   :  { %439 = shalt.err (!%p436_p4)
}
   0xb   :  { %20 = dma.hbm_to_vmem [thread:$0]  %s598_s0, 128, %s18_s16, [#allocation3]  }
   0xc   :  { %460 = dma.done.wait [#allocation3], 128  }
   0xd   :  { %461 = vsyncadd [#allocation3], 4294967168  ;;  %v465_v0 = vmov 0.0   ;;  %v42_v1 = vld [vmem:[%s599_s1 + $0x48] sm:$0xff]  ;;  %v41_v2 = vld [vmem:[%s599_s1 + $0x40] sm:$0xff]  ;;  %vm43_vm0 = vcmask 326656   ;;  %v118_v12 = vlaneseq }
   0xe   :  { %111 = vmatprep.mubr.f32.mxu0 %v465_v0  ;;  %386 = vmatprep.subr.mxu1 %v465_v0  ;;  %v40_v3 = vld [vmem:[%s599_s1 + $0x38] sm:$0xff]  ;;  %v39_v4 = vld [vmem:[%s599_s1 + $0x30] sm:$0xff]  ;;  %v38_v5 = vld [vmem:[%s599_s1 + $0x28] sm:$0xff]  ;;  %vm123_vm1 = vcmask 523264   ;;  %vm466_vm2 = vmmov 0   ;;  %vm242_vm3 = vcmask 261120  }
   0xf   :  { %69 = vmatprep.subr.mxu0 %v42_v1  ;;  %v37_v6 = vld [vmem:[%s599_s1 + $0x20] sm:$0xff]  ;;  %v36_v7 = vld [vmem:[%s599_s1 + $0x18] sm:$0xff]  ;;  %v35_v8 = vld [vmem:[%s599_s1 + $0x10] sm:$0xff]  ;;  %v530_v13 = vshrl.u32 %v118_v12, 7  ;;  %402 = vmatprep.mubr.msk.f32.mxu1 %vm466_vm2, %v465_v0  ;;  %v467_v57 = vmov 0   ;;  %vm354_vm4 = vcmask 57344  }
  0x10   :  { %70 = vmatpush1.msra.mxu0 %v41_v2  ;;  %v34_v9 = vld [vmem:[%s599_s1 + $0x8] sm:$0xff]  ;;  %v33_v10 = vld [vmem:[%s599_s1] sm:$0xff]  ;;  %v164_v22 = vld [vmem:[%s600_s2 + $0x38] sm:$0xff]  ;;  %415 = vset.pattern.permute.xlu0 %v467_v57 }
  0x11   :  { %71 = vmatprep.subr.mxu0 %v40_v3  ;;  %v30_v11 = vld [vmem:[#allocation2] sm:$0xff]  ;;  %v120_v14 = vsub.s32 0, %v530_v13  ;;  %v163_v23 = vld [vmem:[%s600_s2 + $0x30] sm:$0xff]  ;;  %387 = vmatpush3.msra.mxu1 %v164_v22  ;;  %v162_v24 = vld [vmem:[%s600_s2 + $0x28] sm:$0xff]  ;;  %v143_v38 = vsub.s32 1, %v530_v13  ;;  %v148_v39 = vsub.s32 2, %v530_v13 }
  0x12   :  { %72 = vmatpush1.msra.mxu0 %v39_v4  ;;  %v536_v15 = vld [vmem:[%s601_s3] sm:$0xff]  ;;  %388 = vmatprep.subr.mxu1 %v465_v0  ;;  %v160_v26 = vld [vmem:[%s600_s2 + $0x18] sm:$0xff]  ;;  %v159_v27 = vld [vmem:[%s600_s2 + $0x10] sm:$0xff]  ;;  %v167_v48 = vsub.s32 3, %v530_v13  ;;  %v262_v2 = vsub.s32 4, %v530_v13  ;;  %v154_v3 = vsub.s32 6, %v530_v13 }
  0x13   :  { %73 = vmatprep.subr.mxu0 %v38_v5  ;;  %v121_v16 = vrot.slane %v536_v15, %v120_v14  ;;  %389 = vmatpush3.msra.mxu1 %v163_v23  ;;  %v161_v25 = vld [vmem:[%s600_s2 + $0x20] sm:$0xff]  ;;  %v158_v28 = vld [vmem:[%s600_s2 + $0x8] sm:$0xff]  ;;  %v144_v41 = vrot.slane %v536_v15, %v143_v38  ;;  %v149_v44 = vrot.slane %v536_v15, %v148_v39  ;;  %v267_v4 = vsub.s32 5, %v530_v13 }
  0x14   :  { %74 = vmatpush1.msra.mxu0 %v37_v6  ;;  %390 = vmatprep.subr.mxu1 %v465_v0  ;;  %v157_v29 = vld [vmem:[%s600_s2] sm:$0xff]  ;;  %v168_v49 = vrot.slane %v536_v15, %v167_v48  ;;  %v32_v56 = vld [vmem:[%s601_s3 + $0x8] sm:$0xff]  ;;  %v263_v6 = vrot.slane %v536_v15, %v262_v2  ;;  %s468_s3 = smov [#allocation5]  }
  0x15   :  { %75 = vmatprep.subr.mxu0 %v36_v7  ;;  %391 = vmatpush3.msra.mxu1 %v162_v24  ;;  %s362_s30 = sshll.u32 %s468_s3, 4  ;;  %s363_s30 = int_to_ptr.vmem [resolvable:$true] %s362_s30 }
  0x16   :  { %76 = vmatpush1.msra.mxu0 %v35_v8  ;;  %392 = vmatprep.subr.mxu1 %v465_v0  ;;  %v155_v8 = vrot.slane %v536_v15, %v154_v3  ;;  %s440_s5 = scalar_lea.vmem %s363_s30, 16  ;;  %s444_s6 = scalar_lea.vmem %s363_s30, 32 }
  0x17   :  { %77 = vmatprep.subr.mxu0 %v34_v9  ;;  %393 = vmatpush3.msra.mxu1 %v161_v25  ;;  %p441_p5 = scmp.ne.s32.totalorder %s363_s30, %s440_s5  ;;  %p445_p6 = scmp.lt.s32.totalorder %s363_s30, %s363_s30 }
  0x18   :  { %78 = vmatpush1.msra.mxu0 %v33_v10  ;;  %394 = vmatprep.subr.mxu1 %v465_v0  ;;  %v268_v10 = vrot.slane %v536_v15, %v267_v4  ;;  %p446_p7 = scmp.lt.s32.totalorder %s444_s6, %s440_s5 }
  0x19   :  { %371 = vmatmul.mubr.msk.f32.vlgmr.msra.gmra.mxu0 %vm43_vm0, %v30_v11  ;;  %405 = vmatprep.subr.mxu0 %v465_v0 }
  0x1a   :  { %407 = vmatprep.mubr.msk.f32.mxu0 %vm466_vm2, %v465_v0  ;;  %395 = vmatpush3.msra.mxu1 %v160_v26  ;;  %p447_p8 = por %p446_p7, %p445_p6 }
  0x1b   :  { %396 = vmatprep.subr.mxu1 %v465_v0 }
  0x1c   :  { %397 = vmatpush3.msra.mxu1 %v159_v27  ;;  %p448_p9 = pnand %p447_p8, %p441_p5 }
  0x1d   :  { %398 = vmatprep.subr.mxu1 %v465_v0 }
  0x1e   :  { %399 = vmatpush3.msra.mxu1 %v158_v28 }
  0x1f   :  { %400 = vmatprep.subr.mxu1 %v465_v0 }
  0x20   :  { %401 = vmatpush3.msra.mxu1 %v157_v29 }
  0xd9   :  { %v113_v17 = vpop.f32.mrf.mxu0 }
  0xda   :  { %v122_v18 = vadd.f32 %v121_v16, %v113_v17 }
  0xdb   :  { %v115_v11 = vpop.f32.mrf.mxu0 }
  0xdc   :  { %v124_v19 = vsel %vm123_vm1, %v122_v18, 0.0  ;;  %v129_v20 = vmul.f32 %v122_v18, %v122_v18  ;;  %v156_v14 = vadd.f32 %v155_v8, %v115_v11 }
  0xdd   :  { %125 = vadd.xlane.f32.xlu0 %v124_v19  ;;  %v278_v19 = vrot.slane %v536_v15, 7 }
  0xde   :  { %v130_v21 = vsel %vm123_vm1, %v129_v20, 0.0 }
  0xe1   :  { %131 = vadd.xlane.f32.xlu0 %v130_v21 }
  0xf7   :  { %274 = vperm.xlu0 %415, %v32_v56  }
 0x166   :  { %v126_v30 = vpop.xlane.xlu0 %125 }
 0x167   :  { %v128_v31 = vmul.f32 0.015625, %v126_v30 }
 0x169   :  { %v134_v33 = vmul.f32 %v128_v31, %v128_v31  ;;  %v137_v40 = vsub.f32 %v122_v18, %v128_v31 }
 0x16a   :  { %v132_v32 = vpop.xlane.xlu0 %131 }
 0x16b   :  { %v133_v34 = vmul.f32 0.015625, %v132_v32 }
 0x16d   :  { %v135_v35 = vsub.f32 %v133_v34, %v134_v33 }
 0x16f   :  { %v136_v36 = vmax.f32 %v135_v35, 0.0 }
 0x171   :  { %v138_v37 = vadd.f32 1e-05, %v136_v36 }
 0x172   :  { %v275_v13 = vpop.permute.xlu0 %274 }
 0x173   :  { %416 = vrsqrt.f32 %v138_v37 }
 0x180   :  { %v417_v42 = vpop.eup %416 }
 0x181   :  { %v140_v43 = vmul.f32 %v417_v42, %v137_v40 }
 0x183   :  { %v145_v45 = vmul.f32 %v144_v41, %v140_v43 }
 0x185   :  { %v150_v46 = vadd.f32 %v149_v44, %v145_v45 }
 0x187   :  { %v151_v47 = vmax.f32 %v150_v46, 0.0 }
 0x189   :  { %403 = vmatmul.mubr.msk.f32.vlgmr.msra.gmra.mxu1 %vm123_vm1, %v151_v47 }
 0x249   :  { %v238_v50 = vpop.f32.mrf.mxu1 }
 0x24a   :  { %v239_v51 = vadd.f32 %v238_v50, %v168_v49 }
 0x24b   :  { %v404_v52 = vpop.f32.mrf.mxu1 }
 0x24c   :  { %v243_v53 = vsel %vm242_vm3, %v239_v51, 0.0  ;;  %v248_v54 = vmul.f32 %v239_v51, %v239_v51 }
 0x24d   :  { %244 = vadd.xlane.f32.xlu1 %v243_v53 }
 0x24e   :  { %v249_v55 = vsel %vm242_vm3, %v248_v54, 0.0 }
 0x251   :  { %250 = vadd.xlane.f32.xlu1 %v249_v55 }
 0x2d6   :  { %v245_v58 = vpop.xlane.xlu1 %244 }
 0x2d7   :  { %v247_v59 = vmul.f32 0.03125, %v245_v58 }
 0x2d9   :  { %v253_v61 = vmul.f32 %v247_v59, %v247_v59  ;;  %v256_v5 = vsub.f32 %v239_v51, %v247_v59 }
 0x2da   :  { %v251_v60 = vpop.xlane.xlu1 %250 }
 0x2db   :  { %v252_v62 = vmul.f32 0.03125, %v251_v60 }
 0x2dd   :  { %v254_v63 = vsub.f32 %v252_v62, %v253_v61 }
 0x2df   :  { %v255_v0 = vmax.f32 %v254_v63, 0.0 }
 0x2e1   :  { %v257_v1 = vadd.f32 1e-05, %v255_v0 }
 0x2e3   :  { %418 = vrsqrt.f32 %v257_v1 }
 0x2f0   :  { %v419_v7 = vpop.eup %418 }
 0x2f1   :  { %v259_v9 = vmul.f32 %v419_v7, %v256_v5 }
 0x2f3   :  { %v264_v12 = vmul.f32 %v263_v6, %v259_v9 }
 0x2f5   :  { %v269_v16 = vadd.f32 %v268_v10, %v264_v12 }
 0x2f7   :  { %v270_v17 = vadd.f32 %v269_v16, %v156_v14 }
 0x2f9   :  { %v271_v18 = vmax.f32 %v270_v17, 0.0 }
 0x2fb   :  { %406 = vmatpush3.xpose.msk.msra.mxu0 %vm242_vm3, %v271_v18 }
 0x2fe   :  { %408 = vmatmul.mubr.msk.f32.vlgmr.msra.gmra.mxu0 %vm242_vm3, %v278_v19 }
 0x3be   :  { %v350_v20 = vpop.f32.mrf.mxu0 }
 0x3bf   :  { %v351_v21 = vadd.f32 %v350_v20, %v275_v13 }
 0x3c0   :  { %v409_v22 = vpop.f32.mrf.mxu0 }
 0x3c1   :  { %355 = vst.msk [vmem:[#allocation5] sm:$0x1] %vm354_vm4, %v351_v21 }
 0x3c2   :  { %451 = shalt.err (!%p448_p9)
}
 0x3c3   :  { %365 = dma.vmem_to_hbm [thread:$0]  %s363_s30, 16, %s602_s4, [#allocation4]  }
 0x3c4   :  { %462 = dma.done.wait [#allocation4], 16  }
 0x3c5   :  { %463 = vsyncadd [#allocation4], 4294967280 }
 0x3c6   :  { %369 = vsyncpa [#allocation3], 1 }
 0x3c7   :  { %370 = vsyncpa [#allocation4], 1 }

</bundles_post_ra>
